<compile_context>
chip_gen: v7x
topology: tpu7x:2x2x1
jax: 0.10.0
libtpu: 0.0.40
codegen_flags: <defaults>
</compile_context>

<pallas_src>
import jax
import jax.numpy as jnp
from jax.experimental import pallas as pl
from jax.experimental.pallas import tpu as pltpu


# ----------------------------------------------------------------------------- kernels
def _fh_kernel_single_k(x_ref, w_ref, b_ref, o_ref):
    # x_ref: [TM, nf]  (HBM dtype; cast in-kernel, hidden under the DMA)
    # w_ref: [nf, T]   compute dtype, MXU-native layout, resident across grid
    # b_ref: [1,  T]   f32, resident
    # o_ref: [TM, T]
    x = x_ref[...].astype(w_ref.dtype)
    acc = jnp.dot(x, w_ref[...], preferred_element_type=jnp.float32)
    o_ref[...] = (acc + b_ref[...]).astype(o_ref.dtype)


def _fh_kernel_k_tiled(x_ref, w_ref, b_ref, o_ref, acc_ref):
    # Fallback for very large nf: (M, K) grid with f32 accumulator scratch.
    k = pl.program_id(1)

    @pl.when(k == 0)
    def _():
        acc_ref[...] = jnp.zeros_like(acc_ref)

    x = x_ref[...].astype(w_ref.dtype)
    acc_ref[...] += jnp.dot(x, w_ref[...], preferred_element_type=jnp.float32)

    @pl.when(k == pl.num_programs(1) - 1)
    def _():
        o_ref[...] = (acc_ref[...] + b_ref[...]).astype(o_ref.dtype)


# ----------------------------------------------------------------------------- tiling
_TM_CAP = 2048  # 512 rows already ~85% of HBM roofline; 2048 caps VMEM use.


def _vmem_budget_and_limit():
    """Generation-aware budget: ~55% of physical VMEM for tiles, limit ~75%."""
    try:
        info = pltpu.get_tpu_info()
        cap = getattr(info, "vmem_capacity_bytes", None) or getattr(info, "vmem_bytes", None)
        if cap:
            cap = int(cap)
            return int(cap * 0.55), int(cap * 0.75)
    except Exception:
        pass
    # Conservative fallback that fits every generation (incl. v7x 64 MiB).
    return 24 << 20, 32 << 20


def _largest_k_divisor(nf, cap):
    """Largest multiple-of-128 divisor of nf that is <= cap (None if none)."""
    if nf % 128 != 0:
        return None
    t = min(cap, nf)
    t = (t // 128) * 128
    while t >= 128:
        if nf % t == 0:
            return t
        t -= 128
    return None


def _choose_tiles(M, nf, T, x_bytes, w_bytes, o_bytes, vmem_budget,
                  block_m=None, block_k=None):
    def max_tm(tk, with_acc):
        # double-buffered weight slab + bias, then double-buffered x/out tiles
        # (+ f32 accumulator for the K-tiled path) against the budget.
        fixed = 2 * tk * T * w_bytes + 2 * T * 4 + (64 << 10)
        per_row = 2 * tk * x_bytes + 2 * T * o_bytes + (4 * T if with_acc else 0)
        return (vmem_budget - fixed) // per_row

    # K tile: prefer the whole reduction in one MXU pass (no accumulator, no
    # per-K grid overhead, weight fetched once).  K-tile only when the full-nf
    # row is so wide that the M tile would drop below useful DMA granularity.
    if block_k is not None:
        tk = block_k
    else:
        tk = nf
        if max_tm(nf, with_acc=False) < min(256, M):
            tk_target = max(512, vmem_budget // max(1, 2 * 512 * x_bytes))
            cand = _largest_k_divisor(nf, max(128, min(tk_target, nf // 2)))
            if cand is not None:
                tk = cand
            # else: no clean multiple-of-128 divisor -> keep full nf (a smaller
            # M tile beats masking / padding the reduction tail).
    k_tiled = tk < nf

    if block_m is not None:
        tm = block_m
    else:
        tm = min(_TM_CAP, max(8, max_tm(tk, with_acc=k_tiled)))

    # Sublane alignment: full-extent M block is always legal; otherwise align
    # to 256 (MXU pass shape), then 128, then the dtype minimum.
    min_sub = 16 if (x_bytes < 4 or o_bytes < 4) else 8
    if tm >= M:
        tm = M
    else:
        for align in (256, 128, min_sub):
            if tm >= align:
                tm = (tm // align) * align
                break
        tm = max(min_sub, tm)
        if tm >= M:
            tm = M

    return tm, tk


# ----------------------------------------------------------------------------- wrapper
def flatten_head_forward(x, weight, bias, *, use_bf16=True, block_m=None, block_k=None):
    """x: [B, n_vars, d_model, patch_num]; weight: [T, nf] (PyTorch Linear layout);
    bias: [T].  Returns [B, n_vars, T]."""
    B, n_vars, d_model, patch_num = x.shape
    nf = d_model * patch_num
    T, nf_w = weight.shape
    assert nf_w == nf, (weight.shape, nf)
    out_dtype = x.dtype
    M = B * n_vars

    # Flatten(start_dim=-2): contiguous row-major collapse -> [M, nf].
    x2d = x.reshape(M, nf)

    # Compute dtype: bf16 on the MXU by default; both operands normalized to it.
    compute_dtype = jnp.bfloat16 if use_bf16 else (
        jnp.float32 if x2d.dtype == jnp.float32 else x2d.dtype)
    # Pre-transpose the (tiny) weight ONCE to MXU-native [nf, T]; constant-folds.
    w_t = jnp.asarray(weight).T.astype(compute_dtype)
    b2d = jnp.asarray(bias).astype(jnp.float32).reshape(1, T)

    vmem_budget, vmem_limit = _vmem_budget_and_limit()
    x_bytes = jnp.dtype(x2d.dtype).itemsize
    w_bytes = jnp.dtype(compute_dtype).itemsize
    o_bytes = jnp.dtype(out_dtype).itemsize

    tm, tk = _choose_tiles(M, nf, T, x_bytes, w_bytes, o_bytes, vmem_budget,
                           block_m=block_m, block_k=block_k)
    assert nf % tk == 0, "K tile must divide nf (reduction must not see padding)"

    cost = pl.CostEstimate(
        flops=2 * M * nf * T,
        transcendentals=0,
        bytes_accessed=M * nf * x_bytes + nf * T * w_bytes + M * T * o_bytes + 4 * T,
    )

    if tk == nf:
        # Collapsed-K path: one MXU pass per M tile, no accumulator, weight resident.
        out = pl.pallas_call(
            _fh_kernel_single_k,
            out_shape=jax.ShapeDtypeStruct((M, T), out_dtype),
            grid_spec=pltpu.PrefetchScalarGridSpec(
                num_scalar_prefetch=0,
                grid=(pl.cdiv(M, tm),),
                in_specs=[
                    pl.BlockSpec((tm, nf), lambda i: (i, 0)),   # x tile (dominant stream)
                    pl.BlockSpec((nf, T), lambda i: (0, 0)),    # weight, resident
                    pl.BlockSpec((1, T), lambda i: (0, 0)),     # bias, resident
                ],
                out_specs=pl.BlockSpec((tm, T), lambda i: (i, 0)),
            ),
            compiler_params=pltpu.CompilerParams(
                dimension_semantics=("parallel",),
                vmem_limit_bytes=vmem_limit,
            ),
            cost_estimate=cost,
        )(x2d, w_t, b2d)
    else:
        # K-tiled fallback for very large nf.
        out = pl.pallas_call(
            _fh_kernel_k_tiled,
            out_shape=jax.ShapeDtypeStruct((M, T), out_dtype),
            grid_spec=pltpu.PrefetchScalarGridSpec(
                num_scalar_prefetch=0,
                grid=(pl.cdiv(M, tm), nf // tk),
                in_specs=[
                    pl.BlockSpec((tm, tk), lambda i, k: (i, k)),
                    pl.BlockSpec((tk, T), lambda i, k: (k, 0)),
                    pl.BlockSpec((1, T), lambda i, k: (0, 0)),
                ],
                out_specs=pl.BlockSpec((tm, T), lambda i, k: (i, 0)),
                scratch_shapes=[pltpu.VMEM((tm, T), jnp.float32)],
            ),
            compiler_params=pltpu.CompilerParams(
                dimension_semantics=("parallel", "arbitrary"),
                vmem_limit_bytes=vmem_limit,
            ),
            cost_estimate=cost,
        )(x2d, w_t, b2d)

    # TODO(synk): Dropout(head_dropout) with p>0 (training) not implemented; p=0 -> identity.
    return out.reshape(B, n_vars, T)


# ----------------------------------------------------------------------------- tests
if __name__ == "__main__":
    key = jax.random.PRNGKey(0)
    kx, kw, kb = jax.random.split(key, 3)

    B, n_vars, d_model, patch_num = 2, 4, 16, 16
    nf = d_model * patch_num          # 256
    target_window = 32

    x = jax.random.normal(kx, (B, n_vars, d_model, patch_num), dtype=jnp.float32)
    weight = jax.random.normal(kw, (target_window, nf), dtype=jnp.float32) * 0.02
    bias = jax.random.normal(kb, (target_window,), dtype=jnp.float32) * 0.02

    # Pure-JAX references.
    ref_f32 = x.reshape(B, n_vars, nf) @ weight.T + bias
    x_bf = x.reshape(B, n_vars, nf).astype(jnp.bfloat16).astype(jnp.float32)
    w_bf = weight.astype(jnp.bfloat16).astype(jnp.float32)
    ref_bf16 = x_bf @ w_bf.T + bias

    # 1) f32 path (collapsed K, auto tiles): exact check.
    out = flatten_head_forward(x, weight, bias, use_bf16=False)
    jax.block_until_ready(out)
    assert out.shape == (B, n_vars, target_window)
    assert jnp.allclose(out, ref_f32, atol=1e-4, rtol=1e-4)

    # 2) default bf16 compute path (in-kernel x cast): check vs bf16-input reference.
    out_bf = flatten_head_forward(x, weight, bias)
    jax.block_until_ready(out_bf)
    assert jnp.allclose(out_bf, ref_bf16, atol=2e-2, rtol=2e-2)

    # 3) forced K tiling (2 reduction steps) exercises the accumulator fallback kernel.
    out_kt = flatten_head_forward(x, weight, bias, block_k=128)
    jax.block_until_ready(out_kt)
    assert jnp.allclose(out_kt, ref_bf16, atol=2e-2, rtol=2e-2)

    # 4) partial last M block (M=15, TM=8) exercises the masked-writeback path.
    B2, n_vars2, d_model2, patch_num2 = 3, 5, 16, 8
    nf2 = d_model2 * patch_num2       # 128
    x2 = jax.random.normal(kx, (B2, n_vars2, d_model2, patch_num2), dtype=jnp.float32)
    w2 = jax.random.normal(kw, (target_window, nf2), dtype=jnp.float32) * 0.02
    out2 = flatten_head_forward(x2, w2, bias, use_bf16=False, block_m=8)
    jax.block_until_ready(out2)
    ref2 = x2.reshape(B2, n_vars2, nf2) @ w2.T + bias
    assert jnp.allclose(out2, ref2, atol=1e-4, rtol=1e-4)

    print("KERNEL_OK")
</pallas_src>

<mosaic_0001>
module attributes {stable_mosaic.version = 11 : i64} {
  func.func @_fh_kernel_single_k(%arg0: i32, %arg1: memref<8x256xf32, #tpu.memory_space<vmem>>, %arg2: memref<256x32xf32, #tpu.memory_space<vmem>>, %arg3: memref<1x32xf32, #tpu.memory_space<vmem>>, %arg4: memref<8x32xf32, #tpu.memory_space<vmem>>) attributes {dimension_semantics = [#tpu.dimension_semantics<parallel>], iteration_bounds = array<i64: 1>, scalar_prefetch = 0 : i64, scratch_operands = 0 : i64, tpu.core_type = #tpu.core_type<tc>, window_params = [{transform_indices = @transform_0, window_bounds = array<i64: 8, 256>}, {pipeline_mode = #tpu.pipeline_mode<synchronous>, transform_indices = @transform_1, window_bounds = array<i64: 256, 32>}, {pipeline_mode = #tpu.pipeline_mode<synchronous>, transform_indices = @transform_2, window_bounds = array<i64: 1, 32>}, {transform_indices = @transform_3, window_bounds = array<i64: 8, 32>}]} {
    %c0 = arith.constant 0 : index
    %c0_0 = arith.constant 0 : index
    %0 = vector.load %arg1[%c0, %c0_0] : memref<8x256xf32, #tpu.memory_space<vmem>>, vector<8x256xf32>
    %c0_1 = arith.constant 0 : index
    %c0_2 = arith.constant 0 : index
    %1 = vector.load %arg2[%c0_1, %c0_2] : memref<256x32xf32, #tpu.memory_space<vmem>>, vector<256x32xf32>
    %cst = arith.constant dense<0.000000e+00> : vector<8x32xf32>
    %2 = tpu.matmul %0, %1, %cst {dimension_numbers = #tpu.dot_dimension_numbers<[1], [0], [0], [1], [0, 0, 1, 1], [], []>} : vector<8x256xf32>, vector<256x32xf32>, vector<8x32xf32> -> vector<8x32xf32>
    %c0_3 = arith.constant 0 : index
    %c0_4 = arith.constant 0 : index
    %3 = vector.load %arg3[%c0_3, %c0_4] : memref<1x32xf32, #tpu.memory_space<vmem>>, vector<1x32xf32>
    %4 = vector.broadcast %3 : vector<1x32xf32> to vector<8x32xf32>
    %5 = arith.addf %2, %4 : vector<8x32xf32>
    %c0_5 = arith.constant 0 : index
    %c0_6 = arith.constant 0 : index
    %6 = vector.load %arg4[%c0_5, %c0_6] : memref<8x32xf32, #tpu.memory_space<vmem>>, vector<8x32xf32>
    tpu.vector_store %arg4[%c0_5, %c0_6], %5 {strides = array<i32>} : memref<8x32xf32, #tpu.memory_space<vmem>>, vector<8x32xf32>,
    return
  }
  func.func @transform_0(%arg0: i32) -> (i32, i32) {
    %c0_i32 = arith.constant 0 : i32
    %c0_i32_0 = arith.constant 0 : i32
    return %arg0, %c0_i32 : i32, i32
  }
  func.func @transform_1(%arg0: i32) -> (i32, i32) {
    %c0_i32 = arith.constant 0 : i32
    %c0_i32_0 = arith.constant 0 : i32
    %c0_i32_1 = arith.constant 0 : i32
    return %c0_i32, %c0_i32_0 : i32, i32
  }
  func.func @transform_2(%arg0: i32) -> (i32, i32) {
    %c0_i32 = arith.constant 0 : i32
    %c0_i32_0 = arith.constant 0 : i32
    %c0_i32_1 = arith.constant 0 : i32
    return %c0_i32, %c0_i32_0 : i32, i32
  }
  func.func @transform_3(%arg0: i32) -> (i32, i32) {
    %c0_i32 = arith.constant 0 : i32
    %c0_i32_0 = arith.constant 0 : i32
    return %arg0, %c0_i32 : i32, i32
  }
}

</mosaic_0001>

<bundles_post_ra>
// kernel: tpu_custom_call.1
= control target key start
LH: loop header
LB: loop body
LE: loop exit
PB: predicated region body
PF: predicated region fallthrough
CT: control target
= control target key end

     0   :  { %s373_s0 = inlined_call_operand.vmem [shape: f32[8,256], index: 0, kind: input, shape index: {}]   ;;  %s374_s1 = inlined_call_operand.vmem [shape: f32[256,32], index: 1, kind: input, shape index: {}]   ;;  %s375_s2 = inlined_call_operand.vmem [shape: f32[1,32], index: 2, kind: input, shape index: {}]   ;;  %s376_s3 = inlined_call_operand.hbm [shape: f32[8,32], index: 3, kind: output, shape index: {}]  }
   0x1   :  { %v33_v0 = vld [vmem:[%s374_s1 + $0x80] sm:$0xff]  ;;  %v34_v1 = vld [vmem:[%s374_s1 + $0x88] sm:$0xff]  ;;  %v35_v5 = vld [vmem:[%s374_s1 + $0x90] sm:$0xff] }
   0x2   :  { %v17_v2 = vld [vmem:[%s374_s1] sm:$0xff]  ;;  %v178_v3 = vpack.c.bf16 %v34_v1, %v33_v0  ;;  %v18_v4 = vld [vmem:[%s374_s1 + $0x8] sm:$0xff]  ;;  %v36_v6 = vld [vmem:[%s374_s1 + $0x98] sm:$0xff] }
   0x3   :  { %v180_v7 = vpack.c.bf16 %v18_v4, %v17_v2  ;;  %v182_v8 = vpack.c.bf16 %v36_v6, %v35_v5  ;;  %v19_v9 = vld [vmem:[%s374_s1 + $0x10] sm:$0xff]  ;;  %v20_v10 = vld [vmem:[%s374_s1 + $0x18] sm:$0xff]  ;;  %v37_v11 = vld [vmem:[%s374_s1 + $0xa0] sm:$0xff] }
   0x4   :  { %179 = vmatprep.subr.bf16.mxu0 %v178_v3  ;;  %v38_v12 = vld [vmem:[%s374_s1 + $0xa8] sm:$0xff]  ;;  %v184_v13 = vpack.c.bf16 %v20_v10, %v19_v9  ;;  %v21_v15 = vld [vmem:[%s374_s1 + $0x20] sm:$0xff]  ;;  %v39_v17 = vld [vmem:[%s374_s1 + $0xb0] sm:$0xff] }
   0x5   :  { %181 = vmatpush3.bf16.msra.mxu0 %v180_v7  ;;  %v186_v14 = vpack.c.bf16 %v38_v12, %v37_v11  ;;  %v22_v16 = vld [vmem:[%s374_s1 + $0x28] sm:$0xff]  ;;  %v40_v18 = vld [vmem:[%s374_s1 + $0xb8] sm:$0xff]  ;;  %v23_v21 = vld [vmem:[%s374_s1 + $0x30] sm:$0xff] }
   0x6   :  { %183 = vmatprep.subr.bf16.mxu0 %v182_v8  ;;  %v188_v19 = vpack.c.bf16 %v22_v16, %v21_v15  ;;  %v190_v20 = vpack.c.bf16 %v40_v18, %v39_v17  ;;  %v24_v22 = vld [vmem:[%s374_s1 + $0x38] sm:$0xff]  ;;  %v41_v23 = vld [vmem:[%s374_s1 + $0xc0] sm:$0xff]  ;;  %v42_v24 = vld [vmem:[%s374_s1 + $0xc8] sm:$0xff] }
   0x7   :  { %v16_v25 = vld [vmem:[%s373_s0 + $0x8] sm:$0xff] }
   0x8   :  { %120 = vmatprep.mubr.f32.mxu0 %v16_v25 }
   0x9   :  { %185 = vmatpush3.bf16.msra.mxu0 %v184_v13 }
   0xa   :  { %187 = vmatprep.subr.bf16.mxu0 %v186_v14 }
   0xb   :  { %8 = vsyncpa [#allocation3], 0  ;;  %v192_v26 = vpack.c.bf16 %v24_v22, %v23_v21  ;;  %v194_v27 = vpack.c.bf16 %v42_v24, %v41_v23  ;;  %v25_v28 = vld [vmem:[%s374_s1 + $0x40] sm:$0xff]  ;;  %v26_v29 = vld [vmem:[%s374_s1 + $0x48] sm:$0xff]  ;;  %s235_s28 = smov [#allocation2]   ;;  %vm126_vm0 = vcmask 261120  }
   0xc   :  { %v43_v30 = vld [vmem:[%s374_s1 + $0xd0] sm:$0xff]  ;;  %v44_v31 = vld [vmem:[%s374_s1 + $0xd8] sm:$0xff]  ;;  %v196_v32 = vpack.c.bf16 %v26_v29, %v25_v28  ;;  %v45_v36 = vld [vmem:[%s374_s1 + $0xe0] sm:$0xff]  ;;  %s134_s29 = sshll.u32 %s235_s28, 4  ;;  %s135_s29 = int_to_ptr.vmem [resolvable:$true] %s134_s29 }
   0xd   :  { %189 = vmatpush3.bf16.msra.mxu0 %v188_v19  ;;  %v198_v33 = vpack.c.bf16 %v44_v31, %v43_v30  ;;  %v27_v34 = vld [vmem:[%s374_s1 + $0x50] sm:$0xff]  ;;  %v28_v35 = vld [vmem:[%s374_s1 + $0x58] sm:$0xff]  ;;  %v46_v37 = vld [vmem:[%s374_s1 + $0xe8] sm:$0xff]  ;;  %p216_p1 = scmp.lt.s32.totalorder %s135_s29, %s135_s29 }
   0xe   :  { %191 = vmatprep.subr.bf16.mxu0 %v190_v20  ;;  %v200_v38 = vpack.c.bf16 %v28_v35, %v27_v34  ;;  %v202_v39 = vpack.c.bf16 %v46_v37, %v45_v36  ;;  %v29_v40 = vld [vmem:[%s374_s1 + $0x60] sm:$0xff]  ;;  %v30_v41 = vld [vmem:[%s374_s1 + $0x68] sm:$0xff]  ;;  %v47_v42 = vld [vmem:[%s374_s1 + $0xf0] sm:$0xff] }
   0xf   :  { %v48_v43 = vld [vmem:[%s374_s1 + $0xf8] sm:$0xff]  ;;  %v204_v44 = vpack.c.bf16 %v30_v41, %v29_v40  ;;  %v31_v46 = vld [vmem:[%s374_s1 + $0x70] sm:$0xff]  ;;  %v15_v49 = vld [vmem:[%s373_s0] sm:$0xff] }
  0x10   :  { %v206_v45 = vpack.c.bf16 %v48_v43, %v47_v42  ;;  %v32_v47 = vld [vmem:[%s374_s1 + $0x78] sm:$0xff]  ;;  %v142_v51 = vld [vmem:[%s375_s2] ss:$0 sm:$0xff]  ;;  %s211_s1 = scalar_lea.vmem %s135_s29, 128 }
  0x11   :  { %193 = vmatpush3.bf16.msra.mxu0 %v192_v26  ;;  %v208_v48 = vpack.c.bf16 %v32_v47, %v31_v46  ;;  %p212_p0 = scmp.ne.s32.totalorder %s135_s29, %s211_s1  ;;  %p217_p2 = scmp.lt.s32.totalorder %s211_s1, %s211_s1 }
  0x12   :  { %195 = vmatprep.subr.bf16.mxu0 %v194_v27 }
  0x13   :  { %p218_p3 = por %p217_p2, %p216_p1 }
  0x15   :  { %197 = vmatpush3.bf16.msra.mxu0 %v196_v32  ;;  %p219_p4 = pnand %p218_p3, %p212_p0 }
  0x16   :  { %199 = vmatprep.subr.bf16.mxu0 %v198_v33 }
  0x19   :  { %201 = vmatpush3.bf16.msra.mxu0 %v200_v38 }
  0x1a   :  { %203 = vmatprep.subr.bf16.mxu0 %v202_v39 }
  0x1d   :  { %205 = vmatpush3.bf16.msra.mxu0 %v204_v44 }
  0x1e   :  { %207 = vmatprep.subr.bf16.mxu0 %v206_v45 }
  0x21   :  { %209 = vmatpush3.bf16.msra.mxu0 %v208_v48 }
  0x24   :  { %121 = vmatmul.mubr.f32.vlgmr.msra.gmra.mrb[0].mxu0 %v15_v49 }
  0xf7   :  { %v175_v50 = vpop.f32.mrb[0].mxu0 }
  0xf8   :  { %v176_v52 = vpop.f32.mrb[1].mxu0 }
  0xf9   :  { %v177_v53 = vadd.f32 %v176_v52, %v175_v50 }
  0xfb   :  { %v123_v54 = vadd.f32 %v177_v53, %v142_v51 }
  0xfd   :  { %127 = vst.msk [vmem:[#allocation2] sm:$0xff] %vm126_vm0, %v123_v54 }
  0xfe   :  { %222 = shalt.err (!%p219_p4)
}
  0xff   :  { %s223_s4 = scalar_lea.hbm %s376_s3, 128 }
 0x100   :  { %p224_p5 = scmp.ne.s32.totalorder %s376_s3, %s223_s4  ;;  %p227_p6 = scmp.lt.u32.totalorder %s223_s4, %s376_s3 }
 0x102   :  { %p229_p7 = pnand %p227_p6, %p224_p5 }
 0x104   :  { %232 = shalt.err (!%p229_p7)
}
 0x105   :  { %137 = dma.vmem_to_hbm [thread:$0]  %s135_s29, 128, %s376_s3, [#allocation3]  }
 0x106   :  { %233 = dma.done.wait [#allocation3], 128  }
 0x107   :  { %234 = vsyncadd [#allocation3], 4294967168 }
 0x108   :  { %141 = vsyncpa [#allocation3], 1 }

</bundles_post_ra>
